<compile_context>
chip_gen: v7x
topology: tpu7x:2x2x1
jax: 0.10.0
libtpu: 0.0.40
codegen_flags: <defaults>
</compile_context>

<pallas_src>
import math

import jax
import jax.numpy as jnp
from jax import lax
from jax.experimental import pallas as pl
from jax.experimental.pallas import tpu as pltpu

_CHUNK = 128   # lane width of one accumulation chunk (one vreg wide)
_STRIP = 4     # chunks per fori_loop strip


def _round_up(n: int, m: int) -> int:
    return ((n + m - 1) // m) * m


def _cdiv(n: int, m: int) -> int:
    return (n + m - 1) // m


def _make_sum_last2_kernel(tr: int, tk: int, tail: int, grid_k: int):
    """Kernel factory; tr/tk/tail/grid_k are baked in as static constants.

    tr:     rows per block
    tk:     columns per block (always a multiple of 128)
    tail:   number of VALID columns in the last K block (1 <= tail <= tk)
    grid_k: number of K blocks
    """

    def _accumulate(x_ref, acc_ref, n_cols: int):
        """acc_ref[...] += per-row sum of the first n_cols columns of x_ref."""
        n_full, rem = divmod(n_cols, _CHUNK)
        acc = acc_ref[...]

        n_strips, n_left = divmod(n_full, _STRIP)
        if n_strips >= 2:
            strip_w = _STRIP * _CHUNK

            def strip_body(s, a):
                base = pl.multiple_of(s * strip_w, strip_w)
                for c in range(_STRIP):
                    off = pl.multiple_of(base + c * _CHUNK, _CHUNK)
                    a = a + x_ref[:, pl.ds(off, _CHUNK)].astype(jnp.float32)
                return a

            acc = lax.fori_loop(0, n_strips, strip_body, acc)
            base0 = n_strips * strip_w
        else:
            base0 = 0
            n_left = n_full

        for c in range(n_left):
            lo = base0 + c * _CHUNK
            acc = acc + x_ref[:, lo:lo + _CHUNK].astype(jnp.float32)

        if rem:
            # Straddling chunk: only the first `rem` lanes are valid data;
            # the rest is garbage from the partial-block DMA -> mask to zero.
            lo = base0 + n_left * _CHUNK
            lane = lax.broadcasted_iota(jnp.int32, (acc.shape[0], _CHUNK), 1)
            chunk = x_ref[:, lo:lo + _CHUNK].astype(jnp.float32)
            acc = acc + jnp.where(lane < rem, chunk, 0.0)

        acc_ref[...] = acc

    def kernel(x_ref, o_ref, acc_ref):
        kk = pl.program_id(1)

        @pl.when(kk == 0)
        def _init():
            acc_ref[...] = jnp.zeros_like(acc_ref)

        if grid_k == 1:
            _accumulate(x_ref, acc_ref, tail)
        elif tail == tk:
            _accumulate(x_ref, acc_ref, tk)
        else:
            @pl.when(kk < grid_k - 1)
            def _body():
                _accumulate(x_ref, acc_ref, tk)

            @pl.when(kk == grid_k - 1)
            def _last():
                _accumulate(x_ref, acc_ref, tail)

        @pl.when(kk == grid_k - 1)
        def _finalize():
            # ones(1,128) contracted against acc's lane axis -> (1, tr) with the
            # per-row totals already lane-dense -> unmasked stores, no XLU.
            ones_row = jnp.ones((1, _CHUNK), dtype=jnp.float32)
            sums = lax.dot_general(
                ones_row,
                acc_ref[...],
                dimension_numbers=(((1,), (1,)), ((), ())),
                preferred_element_type=jnp.float32,
            )
            o_ref[...] = sums.reshape(o_ref.shape).astype(o_ref.dtype)

    return kernel


def wrapper_module_sum_last2(x: jax.Array, *, block_bytes: int | None = None) -> jax.Array:
    """Equivalent of WrapperModule(torch.sum, dim=(-2, -1))(x) for x of rank >= 2."""
    if x.ndim < 2:
        raise ValueError("need at least 2 dims to reduce over (-2, -1)")

    lead_shape = x.shape[:-2]
    h, w = x.shape[-2], x.shape[-1]
    r = math.prod(lead_shape) if lead_shape else 1
    k = h * w

    if r == 0 or k == 0:
        # Degenerate shapes: sum over an empty reduction is 0.
        return jnp.zeros(lead_shape, dtype=x.dtype)

    x2 = x.reshape(r, k)
    itemsize = jnp.dtype(x.dtype).itemsize

    # ---- generation-aware block byte budget -------------------------------
    vmem_limit = None
    if block_bytes is None:
        try:
            kind = jax.devices()[0].device_kind.lower()
        except Exception:
            kind = ""
        old_gen = any(t in kind for t in ("v2", "v3", "v4", "v5"))
        if old_gen:
            block_bytes = 4 * 1024 * 1024          # fits 16 MiB scoped VMEM (x2 buffers)
        else:
            block_bytes = 8 * 1024 * 1024          # v6e / v7x
            vmem_limit = 32 * 1024 * 1024

    # ---- row tiling (no padding; ragged last row tile is sliced off) ------
    row_align = {4: 8, 2: 16, 1: 32}.get(itemsize, 8)
    if r < row_align:
        tr = r                                      # == full dim (allowed)
    elif r <= 256:
        # >= 2 row tiles when possible so both v7x TensorCores get work.
        tr = _round_up(_cdiv(r, 2), row_align) if r >= 2 * row_align else row_align
    else:
        tr = 128                                    # keeps f32 acc at 16 vregs
    grid_r = _cdiv(r, tr)

    # ---- reduction (K) tiling: constant-byte, balanced blocks, no padding --
    tk_budget = max(_CHUNK, (block_bytes // (tr * itemsize)) // _CHUNK * _CHUNK)
    if k <= tk_budget:
        tk = _round_up(k, _CHUNK)
        grid_k = 1
    else:
        grid_k = _cdiv(k, tk_budget)
        tk = _round_up(_cdiv(k, grid_k), _CHUNK)
        grid_k = _cdiv(k, tk)
    tail = k - (grid_k - 1) * tk                    # valid cols in last K block

    kernel = _make_sum_last2_kernel(tr, tk, tail, grid_k)

    cp_kwargs = dict(dimension_semantics=("parallel", "arbitrary"))
    if vmem_limit is not None:
        cp_kwargs["vmem_limit_bytes"] = vmem_limit

    out = pl.pallas_call(
        kernel,
        out_shape=jax.ShapeDtypeStruct((grid_r, 1, tr), x.dtype),
        grid=(grid_r, grid_k),
        in_specs=[pl.BlockSpec((tr, tk), lambda i, j: (i, j))],
        out_specs=pl.BlockSpec((1, 1, tr), lambda i, j: (i, 0, 0)),
        scratch_shapes=[pltpu.VMEM((tr, _CHUNK), jnp.float32)],
        compiler_params=pltpu.CompilerParams(**cp_kwargs),
        cost_estimate=pl.CostEstimate(
            flops=r * k,
            transcendentals=0,
            bytes_accessed=r * k * itemsize + grid_r * tr * itemsize,
        ),
    )(x2)

    # (grid_r, 1, tr) lane-dense slab -> flat rows -> drop ragged rows -> lead shape.
    return out.reshape(grid_r * tr)[:r].reshape(lead_shape)


if __name__ == "__main__":
    key = jax.random.PRNGKey(0)

    # 1) Primary check: small NCHW input (aligned K, single K block).
    x = jax.random.normal(key, (2, 4, 16, 16), dtype=jnp.float32)
    y = jax.block_until_ready(wrapper_module_sum_last2(x))
    y_ref = jnp.sum(x, axis=(-2, -1))
    assert y.shape == y_ref.shape == (2, 4)
    assert jnp.allclose(y, y_ref, atol=1e-4, rtol=1e-4)

    # 2) Ragged K (2400 not a multiple of 128) + ragged rows (15), no padding:
    #    exercises the fori_loop strip path and the masked tail chunk.
    x2 = jax.random.normal(jax.random.PRNGKey(0), (3, 5, 24, 100), dtype=jnp.float32)
    y2 = jax.block_until_ready(wrapper_module_sum_last2(x2))
    y2_ref = jnp.sum(x2, axis=(-2, -1))
    assert y2.shape == y2_ref.shape == (3, 5)
    assert jnp.allclose(y2, y2_ref, atol=1e-3, rtol=1e-4)

    # 3) Tiny block-byte override to exercise multi-K-block accumulation
    #    (grid_k = 2) with a masked ragged tail, still on a small array.
    x3 = jax.random.normal(jax.random.PRNGKey(0), (2, 3, 40, 50), dtype=jnp.float32)
    y3 = jax.block_until_ready(wrapper_module_sum_last2(x3, block_bytes=32 * 1024))
    y3_ref = jnp.sum(x3, axis=(-2, -1))
    assert y3.shape == y3_ref.shape == (2, 3)
    assert jnp.allclose(y3, y3_ref, atol=1e-3, rtol=1e-4)

    # 4) bf16 input: f32 accumulation in-kernel, output cast back to bf16.
    x4 = jax.random.normal(jax.random.PRNGKey(0), (2, 4, 16, 16), dtype=jnp.bfloat16)
    y4 = jax.block_until_ready(wrapper_module_sum_last2(x4))
    y4_ref = jnp.sum(x4.astype(jnp.float32), axis=(-2, -1)).astype(jnp.bfloat16)
    assert y4.shape == y4_ref.shape == (2, 4)
    assert jnp.allclose(y4.astype(jnp.float32), y4_ref.astype(jnp.float32),
                        atol=2e-2, rtol=2e-2)

    print("KERNEL_OK")
</pallas_src>

<mosaic_0001>
module attributes {stable_mosaic.version = 11 : i64} {
  func.func @kernel(%arg0: i32, %arg1: i32, %arg2: memref<8x256xf32, #tpu.memory_space<vmem>>, %arg3: memref<1x1x8xf32, #tpu.memory_space<vmem>>, %arg4: memref<8x128xf32, #tpu.memory_space<vmem>>) attributes {dimension_semantics = [#tpu.dimension_semantics<parallel>, #tpu.dimension_semantics<arbitrary>], iteration_bounds = array<i64: 1, 1>, scalar_prefetch = 0 : i64, scratch_operands = 1 : i64, tpu.core_type = #tpu.core_type<tc>, window_params = [{transform_indices = @transform_0, window_bounds = array<i64: 8, 256>}, {transform_indices = @transform_1, window_bounds = array<i64: 1, 1, 8>}]} {
    %c0_i32 = arith.constant 0 : i32
    %0 = arith.cmpi eq, %arg1, %c0_i32 : i32
    %1 = arith.extui %0 : i1 to i32
    %c0_i32_0 = arith.constant 0 : i32
    %2 = arith.cmpi ne, %1, %c0_i32_0 : i32
    scf.if %2 {
      %cst = arith.constant 0.000000e+00 : f32
      %12 = vector.broadcast %cst : f32 to vector<8x128xf32>
      %c0_9 = arith.constant 0 : index
      %c0_10 = arith.constant 0 : index
      %13 = vector.load %arg4[%c0_9, %c0_10] : memref<8x128xf32, #tpu.memory_space<vmem>>, vector<8x128xf32>
      tpu.vector_store %arg4[%c0_9, %c0_10], %12 {strides = array<i32>} : memref<8x128xf32, #tpu.memory_space<vmem>>, vector<8x128xf32>,
    } else {
    }
    %c0 = arith.constant 0 : index
    %c0_1 = arith.constant 0 : index
    %3 = vector.load %arg4[%c0, %c0_1] : memref<8x128xf32, #tpu.memory_space<vmem>>, vector<8x128xf32>
    %c0_2 = arith.constant 0 : index
    %c0_3 = arith.constant 0 : index
    %4 = vector.load %arg2[%c0_2, %c0_3] : memref<8x256xf32, #tpu.memory_space<vmem>>, vector<8x128xf32>
    %5 = arith.addf %3, %4 : vector<8x128xf32>
    %c0_4 = arith.constant 0 : index
    %c128 = arith.constant 128 : index
    %6 = vector.load %arg2[%c0_4, %c128] : memref<8x256xf32, #tpu.memory_space<vmem>>, vector<8x128xf32>
    %7 = arith.addf %5, %6 : vector<8x128xf32>
    %c0_5 = arith.constant 0 : index
    %c0_6 = arith.constant 0 : index
    %8 = vector.load %arg4[%c0_5, %c0_6] : memref<8x128xf32, #tpu.memory_space<vmem>>, vector<8x128xf32>
    tpu.vector_store %arg4[%c0_5, %c0_6], %7 {strides = array<i32>} : memref<8x128xf32, #tpu.memory_space<vmem>>, vector<8x128xf32>,
    %c0_i32_7 = arith.constant 0 : i32
    %9 = arith.cmpi eq, %arg1, %c0_i32_7 : i32
    %10 = arith.extui %9 : i1 to i32
    %c0_i32_8 = arith.constant 0 : i32
    %11 = arith.cmpi ne, %10, %c0_i32_8 : i32
    scf.if %11 {
      %cst = arith.constant 1.000000e+00 : f32
      %12 = vector.broadcast %cst : f32 to vector<1x128xf32>
      %c0_9 = arith.constant 0 : index
      %c0_10 = arith.constant 0 : index
      %13 = vector.load %arg4[%c0_9, %c0_10] : memref<8x128xf32, #tpu.memory_space<vmem>>, vector<8x128xf32>
      %cst_11 = arith.constant dense<0.000000e+00> : vector<1x8xf32>
      %14 = tpu.matmul %12, %13, %cst_11 {dimension_numbers = #tpu.dot_dimension_numbers<[1], [1], [0], [0], [0, 0, 1, 0], [], []>} : vector<1x128xf32>, vector<8x128xf32>, vector<1x8xf32> -> vector<1x8xf32>
      %15 = vector.shape_cast %14 : vector<1x8xf32> to vector<1x1x8xf32>
      %c0_12 = arith.constant 0 : index
      %c0_13 = arith.constant 0 : index
      %c0_14 = arith.constant 0 : index
      %16 = vector.load %arg3[%c0_12, %c0_13, %c0_14] : memref<1x1x8xf32, #tpu.memory_space<vmem>>, vector<1x1x8xf32>
      tpu.vector_store %arg3[%c0_12, %c0_13, %c0_14], %15 {strides = array<i32>} : memref<1x1x8xf32, #tpu.memory_space<vmem>>, vector<1x1x8xf32>,
    } else {
    }
    return
  }
  func.func @transform_0(%arg0: i32, %arg1: i32) -> (i32, i32) {
    %c0_i32 = arith.constant 0 : i32
    return %arg0, %arg1 : i32, i32
  }
  func.func @transform_1(%arg0: i32, %arg1: i32) -> (i32, i32, i32) {
    %c0_i32 = arith.constant 0 : i32
    %c0_i32_0 = arith.constant 0 : i32
    %c0_i32_1 = arith.constant 0 : i32
    return %arg0, %c0_i32, %c0_i32_0 : i32, i32, i32
  }
}

</mosaic_0001>

<bundles_post_ra>
// kernel: tpu_custom_call.1
= control target key start
LH: loop header
LB: loop body
LE: loop exit
PB: predicated region body
PF: predicated region fallthrough
CT: control target
= control target key end

     0   :  { %6 = vsyncpa [#allocation4], 0  ;;  %s222_s0 = inlined_call_operand.hbm [shape: f32[8,256], index: 0, kind: input, shape index: {}]   ;;  %s223_s1 = inlined_call_operand.hbm [shape: f32[1,1,8], index: 1, kind: output, shape index: {}]  }
   0x1   :  { %7 = vsyncpa [#allocation5], 0  ;;  %s183_s6 = smov [#allocation3]   ;;  %s135_s10 = scalar_lea.hbm %s222_s0, 256 }
   0x2   :  { %s14_s7 = sshll.u32 %s183_s6, 4  ;;  %p136_p0 = scmp.ne.s32.totalorder %s222_s0, %s135_s10  ;;  %s15_s7 = int_to_ptr.vmem [resolvable:$true] %s14_s7 }
   0x3   :  { %p139_p1 = scmp.lt.u32.totalorder %s135_s10, %s222_s0 }
   0x5   :  { %p141_p2 = pnand %p139_p1, %p136_p0 }
   0x7   :  { %144 = shalt.err (!%p141_p2)
}
   0x8   :  { %s145_s15 = scalar_lea.vmem %s15_s7, 256  ;;  %p150_p4 = scmp.lt.s32.totalorder %s15_s7, %s15_s7 }
   0x9   :  { %p146_p3 = scmp.ne.s32.totalorder %s15_s7, %s145_s15  ;;  %p151_p5 = scmp.lt.s32.totalorder %s145_s15, %s145_s15 }
   0xb   :  { %p152_p6 = por %p151_p5, %p150_p4 }
   0xd   :  { %p153_p7 = pnand %p152_p6, %p146_p3 }
   0xf   :  { %156 = shalt.err (!%p153_p7)
}
  0x10   :  { %17 = dma.hbm_to_vmem [thread:$0]  %s222_s0, 256, %s15_s7, [#allocation4]  }
  0x11   :  { %179 = dma.done.wait [#allocation4], 256  }
  0x12   :  { %180 = vsyncadd [#allocation4], 4294967040  ;;  %v184_v0 = vmov 0.0   ;;  %vm185_vm0 = vmmov 0   ;;  %v27_v1 = vld [vmem:[#allocation3] sm:$0xff]  ;;  %v29_v2 = vld [vmem:[#allocation3 + $0x8] sm:$0xff] }
  0x13   :  { %125 = vmatprep.subr.mxu0 %v184_v0  ;;  %127 = vmatprep.mubr.msk.f32.mxu0 %vm185_vm0, %v184_v0  ;;  %v30_v3 = vadd.f32 %v29_v2, %v27_v1  ;;  %v186_v4 = vmov 1.0   ;;  %s187_s18 = smov [#allocation6]   ;;  %vm106_vm1 = vcmask 57344  }
  0x14   :  { %s114_s19 = sshll.u32 %s187_s18, 4  ;;  %s115_s19 = int_to_ptr.vmem [resolvable:$true] %s114_s19 }
  0x15   :  { %126 = vmatpush3.xpose.msra.mxu0 %v30_v3  ;;  %s157_s0 = scalar_lea.vmem %s115_s19, 16  ;;  %s161_s20 = scalar_lea.vmem %s115_s19, 32 }
  0x16   :  { %p158_p8 = scmp.ne.s32.totalorder %s115_s19, %s157_s0  ;;  %p162_p9 = scmp.lt.s32.totalorder %s115_s19, %s115_s19 }
  0x17   :  { %p163_p10 = scmp.lt.s32.totalorder %s161_s20, %s157_s0 }
  0x18   :  { %128 = vmatmul.mubr.f32.vlgmr.msra.gmra.mrb[0].mxu0 %v186_v4 }
  0x19   :  { %p164_p11 = por %p163_p10, %p162_p9 }
  0x1b   :  { %p165_p12 = pnand %p164_p11, %p158_p8 }
  0xeb   :  { %v102_v5 = vpop.f32.mrb[0].mxu0 }
  0xec   :  { %v129_v6 = vpop.f32.mrb[1].mxu0  ;;  %107 = vst.msk [vmem:[#allocation6] sm:$0x1] %vm106_vm1, %v102_v5 }
  0xed   :  { %168 = shalt.err (!%p165_p12)
}
  0xee   :  { %s169_s23 = scalar_lea.hbm %s223_s1, 16 }
  0xef   :  { %p170_p13 = scmp.ne.s32.totalorder %s223_s1, %s169_s23  ;;  %p173_p0 = scmp.lt.u32.totalorder %s169_s23, %s223_s1 }
  0xf1   :  { %p175_p1 = pnand %p173_p0, %p170_p13 }
  0xf3   :  { %178 = shalt.err (!%p175_p1)
}
  0xf4   :  { %117 = dma.vmem_to_hbm [thread:$0]  %s115_s19, 16, %s223_s1, [#allocation5]  }
  0xf5   :  { %181 = dma.done.wait [#allocation5], 16  }
  0xf6   :  { %182 = vsyncadd [#allocation5], 4294967280 }
  0xf7   :  { %121 = vsyncpa [#allocation4], 1 }
  0xf8   :  { %122 = vsyncpa [#allocation5], 1 }

</bundles_post_ra>
